<compile_context>
chip_gen: v7x
topology: tpu7x:2x2x1
jax: 0.10.0
libtpu: 0.0.40
codegen_flags: <defaults>
</compile_context>

<pallas_src>
import jax
import jax.numpy as jnp
from jax.experimental import pallas as pl
from jax.experimental.pallas import tpu as pltpu

_LANES = 128
_LAYER_SIZES = [(1, 32), (32, 64), (64, 128), (128, 32), (32, 16), (16, 1)]


def _round_up(n, m):
    return ((n + m - 1) // m) * m


# ----------------------------------------------------------------------------
# Kernel
# ----------------------------------------------------------------------------
def _mlp_kernel(x_ref, w_ref, b_ref, o_ref):
    x = x_ref[...]                                        # (TILE_B, 1) f32

    # Layer 1 (1 -> 32): K=1 matmul is degenerate -> VPU broadcast multiply.
    w1_row = w_ref[0, 0:1, :]                             # (1, 128), zero-padded
    h = jnp.maximum(x * w1_row + b_ref[0:1, :], 0.0)      # (TILE_B, 128)

    # Layers 2..5: full 128x128 MXU matmuls on the padded activation.
    for l in range(1, 5):
        z = jnp.dot(h, w_ref[l], preferred_element_type=jnp.float32)
        z = z + b_ref[l:l + 1, :]
        h = jnp.maximum(z, 0.0)

    # Layer 6 (16 -> 1): N=1 matmul is degenerate -> VPU multiply + lane reduce.
    w6_row = w_ref[5, 0:1, :]                             # (1, 128), stored transposed
    o = jnp.sum(h * w6_row, axis=-1, keepdims=True) + b_ref[5:6, 0:1]
    o_ref[...] = o                                        # (TILE_B, 1)


# ----------------------------------------------------------------------------
# Wrapper
# ----------------------------------------------------------------------------
def net_forward(x, w_slab, b_slab, *, tile_b=512):
    """x: (B, 1) f32.  w_slab: (6, 128, 128).  b_slab: (6, 128)."""
    B = x.shape[0]
    tile_b = min(tile_b, _round_up(B, 8))                 # small-batch friendly
    B_pad = _round_up(B, tile_b)
    if B_pad != B:
        x = jnp.pad(x, ((0, B_pad - B), (0, 0)))
    num_tiles = B_pad // tile_b

    out = pl.pallas_call(
        _mlp_kernel,
        out_shape=jax.ShapeDtypeStruct((B_pad, 1), jnp.float32),
        grid=(num_tiles,),
        in_specs=[
            pl.BlockSpec((tile_b, 1), lambda i: (i, 0)),            # x tile
            pl.BlockSpec((6, _LANES, _LANES), lambda i: (0, 0, 0)),  # weights (resident)
            pl.BlockSpec((6, _LANES), lambda i: (0, 0)),            # biases  (resident)
        ],
        out_specs=pl.BlockSpec((tile_b, 1), lambda i: (i, 0)),
        compiler_params=pltpu.CompilerParams(
            dimension_semantics=("parallel",)),
    )(x, w_slab, b_slab)
    return out[:B]


# ----------------------------------------------------------------------------
# Parameter handling
# ----------------------------------------------------------------------------
def init_params(key):
    """Matches torch.nn.Linear default init scale; W_l: (in, out), b_l: (1, out)."""
    params = []
    for (fan_in, fan_out) in _LAYER_SIZES:
        key, kw, kb = jax.random.split(key, 3)
        bound = 1.0 / (fan_in ** 0.5)
        w = jax.random.uniform(kw, (fan_in, fan_out), jnp.float32, -bound, bound)
        b = jax.random.uniform(kb, (1, fan_out), jnp.float32, -bound, bound)
        params.append((w, b))
    return params


def pack_params(params):
    """Pack 6 (W, b) pairs into zero-padded slabs (2 DMAs instead of 14)."""
    w_slab = jnp.zeros((6, _LANES, _LANES), jnp.float32)
    b_slab = jnp.zeros((6, _LANES), jnp.float32)
    for l, (w, b) in enumerate(params):
        if l == 5:
            w = w.T  # final (16,1) stored as a (1,16) row -> weights on lanes
        fi, fo = w.shape
        w_slab = w_slab.at[l, :fi, :fo].set(w)
        bf = b.reshape(-1)
        b_slab = b_slab.at[l, :bf.shape[0]].set(bf)
    return w_slab, b_slab


def reference_forward(x, params):
    """Plain-JAX reference for correctness checking."""
    h = x
    for i, (w, b) in enumerate(params):
        h = h @ w + b
        if i < len(params) - 1:
            h = jnp.maximum(h, 0.0)
    return h


# ----------------------------------------------------------------------------
# Self-test
# ----------------------------------------------------------------------------
if __name__ == "__main__":
    key = jax.random.PRNGKey(0)
    key, kx = jax.random.split(key)
    params = init_params(key)
    w_slab, b_slab = pack_params(params)

    # Small smoke test (single tile).
    B = 8
    x = jax.random.normal(kx, (B, 1), jnp.float32)
    out = jax.block_until_ready(net_forward(x, w_slab, b_slab))
    ref = reference_forward(x, params)
    assert out.shape == (B, 1)
    assert jnp.allclose(out, ref, atol=1e-4, rtol=1e-4), "mismatch vs reference (B=8)"

    # Multi-tile + padding path (exercises the batch grid and parallel axis).
    key, kx2 = jax.random.split(key)
    B2 = 300
    x2 = jax.random.normal(kx2, (B2, 1), jnp.float32)
    out2 = jax.block_until_ready(net_forward(x2, w_slab, b_slab, tile_b=128))
    ref2 = reference_forward(x2, params)
    assert out2.shape == (B2, 1)
    assert jnp.allclose(out2, ref2, atol=1e-4, rtol=1e-4), "mismatch vs reference (B=300)"

    print("KERNEL_OK")
</pallas_src>

<mosaic_0001>
module attributes {stable_mosaic.version = 11 : i64} {
  func.func @_mlp_kernel(%arg0: i32, %arg1: memref<8x1xf32, #tpu.memory_space<vmem>>, %arg2: memref<6x128x128xf32, #tpu.memory_space<vmem>>, %arg3: memref<6x128xf32, #tpu.memory_space<vmem>>, %arg4: memref<8x1xf32, #tpu.memory_space<vmem>>) attributes {dimension_semantics = [#tpu.dimension_semantics<parallel>], iteration_bounds = array<i64: 1>, scalar_prefetch = 0 : i64, scratch_operands = 0 : i64, tpu.core_type = #tpu.core_type<tc>, window_params = [{transform_indices = @transform_0, window_bounds = array<i64: 8, 1>}, {pipeline_mode = #tpu.pipeline_mode<synchronous>, transform_indices = @transform_1, window_bounds = array<i64: 6, 128, 128>}, {pipeline_mode = #tpu.pipeline_mode<synchronous>, transform_indices = @transform_2, window_bounds = array<i64: 6, 128>}, {transform_indices = @transform_3, window_bounds = array<i64: 8, 1>}]} {
    %c0 = arith.constant 0 : index
    %c0_0 = arith.constant 0 : index
    %0 = vector.load %arg1[%c0, %c0_0] : memref<8x1xf32, #tpu.memory_space<vmem>>, vector<8x1xf32>
    %c0_1 = arith.constant 0 : index
    %c0_2 = arith.constant 0 : index
    %c0_3 = arith.constant 0 : index
    %1 = vector.load %arg2[%c0_1, %c0_2, %c0_3] : memref<6x128x128xf32, #tpu.memory_space<vmem>>, vector<1x1x128xf32>
    %2 = vector.shape_cast %1 : vector<1x1x128xf32> to vector<1x128xf32>
    %3 = vector.broadcast %0 : vector<8x1xf32> to vector<8x128xf32>
    %4 = vector.broadcast %2 : vector<1x128xf32> to vector<8x128xf32>
    %5 = arith.mulf %3, %4 : vector<8x128xf32>
    %c0_4 = arith.constant 0 : index
    %c0_5 = arith.constant 0 : index
    %6 = vector.load %arg3[%c0_4, %c0_5] : memref<6x128xf32, #tpu.memory_space<vmem>>, vector<1x128xf32>
    %7 = vector.broadcast %6 : vector<1x128xf32> to vector<8x128xf32>
    %8 = arith.addf %5, %7 : vector<8x128xf32>
    %cst = arith.constant 0.000000e+00 : f32
    %9 = vector.broadcast %cst : f32 to vector<8x128xf32>
    %10 = arith.maximumf %8, %9 : vector<8x128xf32>
    %c1 = arith.constant 1 : index
    %c0_6 = arith.constant 0 : index
    %c0_7 = arith.constant 0 : index
    %11 = vector.load %arg2[%c1, %c0_6, %c0_7] : memref<6x128x128xf32, #tpu.memory_space<vmem>>, vector<1x128x128xf32>
    %12 = vector.shape_cast %11 : vector<1x128x128xf32> to vector<128x128xf32>
    %cst_8 = arith.constant dense<0.000000e+00> : vector<8x128xf32>
    %13 = tpu.matmul %10, %12, %cst_8 {dimension_numbers = #tpu.dot_dimension_numbers<[1], [0], [0], [1], [0, 0, 1, 1], [], []>} : vector<8x128xf32>, vector<128x128xf32>, vector<8x128xf32> -> vector<8x128xf32>
    %c1_9 = arith.constant 1 : index
    %c0_10 = arith.constant 0 : index
    %14 = vector.load %arg3[%c1_9, %c0_10] : memref<6x128xf32, #tpu.memory_space<vmem>>, vector<1x128xf32>
    %15 = vector.broadcast %14 : vector<1x128xf32> to vector<8x128xf32>
    %16 = arith.addf %13, %15 : vector<8x128xf32>
    %cst_11 = arith.constant 0.000000e+00 : f32
    %17 = vector.broadcast %cst_11 : f32 to vector<8x128xf32>
    %18 = arith.maximumf %16, %17 : vector<8x128xf32>
    %c2 = arith.constant 2 : index
    %c0_12 = arith.constant 0 : index
    %c0_13 = arith.constant 0 : index
    %19 = vector.load %arg2[%c2, %c0_12, %c0_13] : memref<6x128x128xf32, #tpu.memory_space<vmem>>, vector<1x128x128xf32>
    %20 = vector.shape_cast %19 : vector<1x128x128xf32> to vector<128x128xf32>
    %cst_14 = arith.constant dense<0.000000e+00> : vector<8x128xf32>
    %21 = tpu.matmul %18, %20, %cst_14 {dimension_numbers = #tpu.dot_dimension_numbers<[1], [0], [0], [1], [0, 0, 1, 1], [], []>} : vector<8x128xf32>, vector<128x128xf32>, vector<8x128xf32> -> vector<8x128xf32>
    %c2_15 = arith.constant 2 : index
    %c0_16 = arith.constant 0 : index
    %22 = vector.load %arg3[%c2_15, %c0_16] : memref<6x128xf32, #tpu.memory_space<vmem>>, vector<1x128xf32>
    %23 = vector.broadcast %22 : vector<1x128xf32> to vector<8x128xf32>
    %24 = arith.addf %21, %23 : vector<8x128xf32>
    %cst_17 = arith.constant 0.000000e+00 : f32
    %25 = vector.broadcast %cst_17 : f32 to vector<8x128xf32>
    %26 = arith.maximumf %24, %25 : vector<8x128xf32>
    %c3 = arith.constant 3 : index
    %c0_18 = arith.constant 0 : index
    %c0_19 = arith.constant 0 : index
    %27 = vector.load %arg2[%c3, %c0_18, %c0_19] : memref<6x128x128xf32, #tpu.memory_space<vmem>>, vector<1x128x128xf32>
    %28 = vector.shape_cast %27 : vector<1x128x128xf32> to vector<128x128xf32>
    %cst_20 = arith.constant dense<0.000000e+00> : vector<8x128xf32>
    %29 = tpu.matmul %26, %28, %cst_20 {dimension_numbers = #tpu.dot_dimension_numbers<[1], [0], [0], [1], [0, 0, 1, 1], [], []>} : vector<8x128xf32>, vector<128x128xf32>, vector<8x128xf32> -> vector<8x128xf32>
    %c3_21 = arith.constant 3 : index
    %c0_22 = arith.constant 0 : index
    %30 = vector.load %arg3[%c3_21, %c0_22] : memref<6x128xf32, #tpu.memory_space<vmem>>, vector<1x128xf32>
    %31 = vector.broadcast %30 : vector<1x128xf32> to vector<8x128xf32>
    %32 = arith.addf %29, %31 : vector<8x128xf32>
    %cst_23 = arith.constant 0.000000e+00 : f32
    %33 = vector.broadcast %cst_23 : f32 to vector<8x128xf32>
    %34 = arith.maximumf %32, %33 : vector<8x128xf32>
    %c4 = arith.constant 4 : index
    %c0_24 = arith.constant 0 : index
    %c0_25 = arith.constant 0 : index
    %35 = vector.load %arg2[%c4, %c0_24, %c0_25] : memref<6x128x128xf32, #tpu.memory_space<vmem>>, vector<1x128x128xf32>
    %36 = vector.shape_cast %35 : vector<1x128x128xf32> to vector<128x128xf32>
    %cst_26 = arith.constant dense<0.000000e+00> : vector<8x128xf32>
    %37 = tpu.matmul %34, %36, %cst_26 {dimension_numbers = #tpu.dot_dimension_numbers<[1], [0], [0], [1], [0, 0, 1, 1], [], []>} : vector<8x128xf32>, vector<128x128xf32>, vector<8x128xf32> -> vector<8x128xf32>
    %c4_27 = arith.constant 4 : index
    %c0_28 = arith.constant 0 : index
    %38 = vector.load %arg3[%c4_27, %c0_28] : memref<6x128xf32, #tpu.memory_space<vmem>>, vector<1x128xf32>
    %39 = vector.broadcast %38 : vector<1x128xf32> to vector<8x128xf32>
    %40 = arith.addf %37, %39 : vector<8x128xf32>
    %cst_29 = arith.constant 0.000000e+00 : f32
    %41 = vector.broadcast %cst_29 : f32 to vector<8x128xf32>
    %42 = arith.maximumf %40, %41 : vector<8x128xf32>
    %c5 = arith.constant 5 : index
    %c0_30 = arith.constant 0 : index
    %c0_31 = arith.constant 0 : index
    %43 = vector.load %arg2[%c5, %c0_30, %c0_31] : memref<6x128x128xf32, #tpu.memory_space<vmem>>, vector<1x1x128xf32>
    %44 = vector.shape_cast %43 : vector<1x1x128xf32> to vector<1x128xf32>
    %45 = vector.broadcast %44 : vector<1x128xf32> to vector<8x128xf32>
    %46 = arith.mulf %42, %45 : vector<8x128xf32>
    %cst_32 = arith.constant dense<0.000000e+00> : vector<8xf32>
    %47 = vector.multi_reduction <add>, %46, %cst_32 [1] : vector<8x128xf32> to vector<8xf32>
    %48 = vector.shape_cast %47 : vector<8xf32> to vector<8x1xf32>
    %c5_33 = arith.constant 5 : index
    %c0_34 = arith.constant 0 : index
    %49 = vector.load %arg3[%c5_33, %c0_34] : memref<6x128xf32, #tpu.memory_space<vmem>>, vector<1x1xf32>
    %50 = vector.broadcast %49 : vector<1x1xf32> to vector<8x1xf32>
    %51 = arith.addf %48, %50 : vector<8x1xf32>
    %c0_35 = arith.constant 0 : index
    %c0_36 = arith.constant 0 : index
    %52 = vector.load %arg4[%c0_35, %c0_36] : memref<8x1xf32, #tpu.memory_space<vmem>>, vector<8x1xf32>
    tpu.vector_store %arg4[%c0_35, %c0_36], %51 {strides = array<i32>} : memref<8x1xf32, #tpu.memory_space<vmem>>, vector<8x1xf32>,
    return
  }
  func.func @transform_0(%arg0: i32) -> (i32, i32) {
    %c0_i32 = arith.constant 0 : i32
    %c0_i32_0 = arith.constant 0 : i32
    return %arg0, %c0_i32 : i32, i32
  }
  func.func @transform_1(%arg0: i32) -> (i32, i32, i32) {
    %c0_i32 = arith.constant 0 : i32
    %c0_i32_0 = arith.constant 0 : i32
    %c0_i32_1 = arith.constant 0 : i32
    %c0_i32_2 = arith.constant 0 : i32
    return %c0_i32, %c0_i32_0, %c0_i32_1 : i32, i32, i32
  }
  func.func @transform_2(%arg0: i32) -> (i32, i32) {
    %c0_i32 = arith.constant 0 : i32
    %c0_i32_0 = arith.constant 0 : i32
    %c0_i32_1 = arith.constant 0 : i32
    return %c0_i32, %c0_i32_0 : i32, i32
  }
  func.func @transform_3(%arg0: i32) -> (i32, i32) {
    %c0_i32 = arith.constant 0 : i32
    %c0_i32_0 = arith.constant 0 : i32
    return %arg0, %c0_i32 : i32, i32
  }
}

</mosaic_0001>

<bundles_post_ra>
// kernel: tpu_custom_call.1
= control target key start
LH: loop header
LB: loop body
LE: loop exit
PB: predicated region body
PF: predicated region fallthrough
CT: control target
= control target key end

     0   :  { %8 = vsyncpa [#allocation3], 0  ;;  %s785_s12 = smov [#allocation2]   ;;  %s888_s0 = inlined_call_operand.vmem [shape: f32[8,1], index: 0, kind: input, shape index: {}]   ;;  %s889_s1 = inlined_call_operand.hbm [shape: f32[6,128,128], index: 1, kind: input, shape index: {}]   ;;  %s890_s2 = inlined_call_operand.vmem [shape: f32[6,128], index: 2, kind: input, shape index: {}]   ;;  %s891_s3 = inlined_call_operand.vmem [shape: f32[8,1], index: 3, kind: output, shape index: {}]  }
   0x1   :  { %s16_s13 = sshll.u32 %s785_s12, 4  ;;  %s761_s16 = scalar_lea.hbm %s889_s1, 12288  ;;  %s17_s13 = int_to_ptr.vmem [resolvable:$true] %s16_s13 }
   0x2   :  { %p762_p0 = scmp.ne.s32.totalorder %s889_s1, %s761_s16  ;;  %p765_p1 = scmp.lt.u32.totalorder %s761_s16, %s889_s1 }
   0x4   :  { %p767_p2 = pnand %p765_p1, %p762_p0 }
   0x6   :  { %770 = shalt.err (!%p767_p2)
}
   0x7   :  { %s771_s21 = scalar_lea.vmem %s17_s13, 12288  ;;  %p776_p4 = scmp.lt.s32.totalorder %s17_s13, %s17_s13 }
   0x8   :  { %p772_p3 = scmp.ne.s32.totalorder %s17_s13, %s771_s21  ;;  %p777_p5 = scmp.lt.s32.totalorder %s771_s21, %s771_s21 }
   0xa   :  { %p778_p6 = por %p777_p5, %p776_p4 }
   0xc   :  { %p779_p7 = pnand %p778_p6, %p772_p3 }
   0xe   :  { %782 = shalt.err (!%p779_p7)
}
   0xf   :  { %s786_s22 = smov 128   ;;  %s787_s23 = smov 8  }
  0x10   :  { %22 = dma.hbm_to_vmem [thread:$0]  %s889_s1, 12288, %s17_s13, [#allocation3], %s786_s22, %s786_s22, %s787_s23  }
  0x11   :  { %783 = dma.done.wait [#allocation3], 12288  }
  0x12   :  { %784 = vsyncadd [#allocation3], 4294955008  ;;  %v788_v0 = vmov 0   ;;  %v789_v1 = vmov 0.0|0.0   ;;  %v28_v2 = vld [vmem:[%s888_s0] sm:$0xff]  ;;  %v48_v3 = vld [vmem:[#allocation2 + $0x80] sm:$0xff] }
  0x13   :  { %760 = vset.pattern.permute.xlu0 %v788_v0  ;;  %657 = vmatprep.subr.bf16.mxu0 %v789_v1  ;;  %v49_v4 = vld [vmem:[#allocation2 + $0x88] sm:$0xff]  ;;  %v50_v6 = vld [vmem:[#allocation2 + $0x90] sm:$0xff]  ;;  %v51_v7 = vld [vmem:[#allocation2 + $0x98] sm:$0xff]  ;;  %vm790_vm0 = vmmov 0   ;;  %v791_v12 = vmov 0.0   ;;  %vm434_vm1 = vcmask 7168  }
  0x14   :  { %681 = vmatprep.subr.bf16.mxu1 %v789_v1  ;;  %32 = vperm.xlu0 %760, %v28_v2   ;;  %v658_v5 = vpack.c.bf16 %v49_v4, %v48_v3  ;;  %v661_v8 = vpack.c.bf16 %v51_v7, %v50_v6  ;;  %v52_v9 = vld [vmem:[#allocation2 + $0xa0] sm:$0xff]  ;;  %v53_v10 = vld [vmem:[#allocation2 + $0xa8] sm:$0xff]  ;;  %v143_v15 = vld [vmem:[#allocation2 + $0x110] sm:$0xff] }
  0x15   :  { %v664_v11 = vpack.c.bf16 %v53_v10, %v52_v9  ;;  %549 = vmatprep.mubr.msk.f32.mxu0 %vm790_vm0, %v791_v12  ;;  %v141_v13 = vld [vmem:[#allocation2 + $0x100] sm:$0xff]  ;;  %v142_v14 = vld [vmem:[#allocation2 + $0x108] sm:$0xff]  ;;  %v54_v16 = vld [vmem:[#allocation2 + $0xb0] sm:$0xff]  ;;  %584 = vmatprep.mubr.msk.f32.mxu1 %vm790_vm0, %v791_v12 }
  0x16   :  { %659 = vmatpush3.bf16.msra.mxu0 %v658_v5  ;;  %v55_v17 = vld [vmem:[#allocation2 + $0xb8] sm:$0xff]  ;;  %v682_v18 = vpack.c.bf16 %v142_v14, %v141_v13  ;;  %v145_v22 = vld [vmem:[#allocation2 + $0x120] sm:$0xff]  ;;  %v146_v23 = vld [vmem:[#allocation2 + $0x128] sm:$0xff] }
  0x17   :  { %660 = vmatprep.subr.bf16.mxu0 %v789_v1  ;;  %v144_v19 = vld [vmem:[#allocation2 + $0x118] sm:$0xff]  ;;  %v667_v21 = vpack.c.bf16 %v55_v17, %v54_v16  ;;  %v56_v24 = vld [vmem:[#allocation2 + $0xc0] sm:$0xff]  ;;  %v57_v25 = vld [vmem:[#allocation2 + $0xc8] sm:$0xff]  ;;  %v688_v26 = vpack.c.bf16 %v146_v23, %v145_v22 }
  0x18   :  { %683 = vmatpush3.bf16.msra.mxu1 %v682_v18  ;;  %v685_v20 = vpack.c.bf16 %v144_v19, %v143_v15  ;;  %v670_v27 = vpack.c.bf16 %v57_v25, %v56_v24  ;;  %v147_v28 = vld [vmem:[#allocation2 + $0x130] sm:$0xff]  ;;  %v148_v29 = vld [vmem:[#allocation2 + $0x138] sm:$0xff]  ;;  %v149_v34 = vld [vmem:[#allocation2 + $0x140] sm:$0xff] }
  0x19   :  { %684 = vmatprep.subr.bf16.mxu1 %v789_v1  ;;  %v58_v30 = vld [vmem:[#allocation2 + $0xd0] sm:$0xff]  ;;  %v59_v31 = vld [vmem:[#allocation2 + $0xd8] sm:$0xff]  ;;  %v691_v32 = vpack.c.bf16 %v148_v29, %v147_v28  ;;  %v150_v35 = vld [vmem:[#allocation2 + $0x148] sm:$0xff] }
  0x1a   :  { %662 = vmatpush3.bf16.msra.mxu0 %v661_v8  ;;  %v673_v33 = vpack.c.bf16 %v59_v31, %v58_v30  ;;  %v60_v36 = vld [vmem:[#allocation2 + $0xe0] sm:$0xff]  ;;  %v61_v37 = vld [vmem:[#allocation2 + $0xe8] sm:$0xff]  ;;  %v694_v38 = vpack.c.bf16 %v150_v35, %v149_v34  ;;  %v151_v40 = vld [vmem:[#allocation2 + $0x150] sm:$0xff] }
  0x1b   :  { %663 = vmatprep.subr.bf16.mxu0 %v789_v1  ;;  %v676_v39 = vpack.c.bf16 %v61_v37, %v60_v36  ;;  %v152_v41 = vld [vmem:[#allocation2 + $0x158] sm:$0xff]  ;;  %v62_v42 = vld [vmem:[#allocation2 + $0xf0] sm:$0xff]  ;;  %v153_v46 = vld [vmem:[#allocation2 + $0x160] sm:$0xff] }
  0x1c   :  { %686 = vmatpush3.bf16.msra.mxu1 %v685_v20  ;;  %v63_v43 = vld [vmem:[#allocation2 + $0xf8] sm:$0xff]  ;;  %v697_v44 = vpack.c.bf16 %v152_v41, %v151_v40  ;;  %v154_v47 = vld [vmem:[#allocation2 + $0x168] sm:$0xff]  ;;  %v441_v49 = vld [vmem:[#allocation2] ss:$0 sm:$0xff] }
  0x1d   :  { %687 = vmatprep.subr.bf16.mxu1 %v789_v1  ;;  %v679_v45 = vpack.c.bf16 %v63_v43, %v62_v42  ;;  %v700_v48 = vpack.c.bf16 %v154_v47, %v153_v46  ;;  %v442_v50 = vld [vmem:[%s890_s2] ss:$0 sm:$0xff]  ;;  %v155_v55 = vld [vmem:[#allocation2 + $0x170] sm:$0xff]  ;;  %v234_v58 = vld [vmem:[#allocation2 + $0x180] sm:$0xff] }
  0x1e   :  { %665 = vmatpush3.bf16.msra.mxu0 %v664_v11  ;;  %v156_v56 = vld [vmem:[#allocation2 + $0x178] sm:$0xff]  ;;  %v235_v59 = vld [vmem:[#allocation2 + $0x188] sm:$0xff]  ;;  %v236_v60 = vld [vmem:[#allocation2 + $0x190] sm:$0xff] }
  0x1f   :  { %666 = vmatprep.subr.bf16.mxu0 %v789_v1  ;;  %v703_v57 = vpack.c.bf16 %v156_v56, %v155_v55  ;;  %v706_v61 = vpack.c.bf16 %v235_v59, %v234_v58  ;;  %v237_v62 = vld [vmem:[#allocation2 + $0x198] sm:$0xff]  ;;  %v238_v0 = vld [vmem:[#allocation2 + $0x1a0] sm:$0xff]  ;;  %v239_v2 = vld [vmem:[#allocation2 + $0x1a8] sm:$0xff] }
  0x20   :  { %689 = vmatpush3.bf16.msra.mxu1 %v688_v26  ;;  %v709_v63 = vpack.c.bf16 %v237_v62, %v236_v60  ;;  %v712_v3 = vpack.c.bf16 %v239_v2, %v238_v0  ;;  %v240_v4 = vld [vmem:[#allocation2 + $0x1b0] sm:$0xff]  ;;  %v241_v5 = vld [vmem:[#allocation2 + $0x1b8] sm:$0xff]  ;;  %v242_v7 = vld [vmem:[#allocation2 + $0x1c0] sm:$0xff] }
  0x21   :  { %690 = vmatprep.subr.bf16.mxu1 %v789_v1  ;;  %v715_v6 = vpack.c.bf16 %v241_v5, %v240_v4  ;;  %v243_v8 = vld [vmem:[#allocation2 + $0x1c8] sm:$0xff]  ;;  %v244_v10 = vld [vmem:[#allocation2 + $0x1d0] sm:$0xff]  ;;  %v245_v11 = vld [vmem:[#allocation2 + $0x1d8] sm:$0xff] }
  0x22   :  { %668 = vmatpush3.bf16.msra.mxu0 %v667_v21  ;;  %v718_v9 = vpack.c.bf16 %v243_v8, %v242_v7  ;;  %v721_v13 = vpack.c.bf16 %v245_v11, %v244_v10  ;;  %v246_v14 = vld [vmem:[#allocation2 + $0x1e0] sm:$0xff]  ;;  %v247_v15 = vld [vmem:[#allocation2 + $0x1e8] sm:$0xff]  ;;  %v443_v17 = vld [vmem:[%s890_s2 + $0x1] ss:$0 sm:$0xff] }
  0x23   :  { %669 = vmatprep.subr.bf16.mxu0 %v789_v1  ;;  %v724_v16 = vpack.c.bf16 %v247_v15, %v246_v14  ;;  %v248_v22 = vld [vmem:[#allocation2 + $0x1f0] sm:$0xff]  ;;  %v249_v23 = vld [vmem:[#allocation2 + $0x1f8] sm:$0xff]  ;;  %v327_v25 = vld [vmem:[#allocation2 + $0x200] sm:$0xff] }
  0x24   :  { %692 = vmatpush3.bf16.msra.mxu1 %v691_v32  ;;  %v727_v24 = vpack.c.bf16 %v249_v23, %v248_v22  ;;  %v328_v26 = vld [vmem:[#allocation2 + $0x208] sm:$0xff]  ;;  %v330_v29 = vld [vmem:[#allocation2 + $0x218] sm:$0xff]  ;;  %v331_v31 = vld [vmem:[#allocation2 + $0x220] sm:$0xff] }
  0x25   :  { %693 = vmatprep.subr.bf16.mxu1 %v789_v1  ;;  %v730_v28 = vpack.c.bf16 %v328_v26, %v327_v25  ;;  %v332_v32 = vld [vmem:[#allocation2 + $0x228] sm:$0xff]  ;;  %v334_v34 = vld [vmem:[#allocation2 + $0x238] sm:$0xff]  ;;  %v335_v36 = vld [vmem:[#allocation2 + $0x240] sm:$0xff] }
  0x26   :  { %671 = vmatpush3.bf16.msra.mxu0 %v670_v27  ;;  %v329_v27 = vld [vmem:[#allocation2 + $0x210] sm:$0xff]  ;;  %v336_v37 = vld [vmem:[#allocation2 + $0x248] sm:$0xff]  ;;  %v338_v40 = vld [vmem:[#allocation2 + $0x258] sm:$0xff] }
  0x27   :  { %672 = vmatprep.subr.bf16.mxu0 %v789_v1  ;;  %v733_v30 = vpack.c.bf16 %v330_v29, %v329_v27  ;;  %v339_v42 = vld [vmem:[#allocation2 + $0x260] sm:$0xff]  ;;  %v340_v43 = vld [vmem:[#allocation2 + $0x268] sm:$0xff]  ;;  %v448_v0 = vld [vmem:[%s890_s2 + $0x5] ss:$0 sm:$0xff] }
  0x28   :  { %695 = vmatpush3.bf16.msra.mxu1 %v694_v38  ;;  %v742_v38 = vpack.c.bf16 %v336_v37, %v335_v36 }
  0x29   :  { %696 = vmatprep.subr.bf16.mxu1 %v789_v1 }
  0x2a   :  { %674 = vmatpush3.bf16.msra.mxu0 %v673_v33  ;;  %v736_v33 = vpack.c.bf16 %v332_v32, %v331_v31 }
  0x2b   :  { %675 = vmatprep.subr.bf16.mxu0 %v789_v1 }
  0x2c   :  { %698 = vmatpush3.bf16.msra.mxu1 %v697_v44  ;;  %v748_v44 = vpack.c.bf16 %v340_v43, %v339_v42 }
  0x2d   :  { %699 = vmatprep.subr.bf16.mxu1 %v789_v1 }
  0x2e   :  { %677 = vmatpush3.bf16.msra.mxu0 %v676_v39  ;;  %v337_v39 = vld [vmem:[#allocation2 + $0x250] sm:$0xff] }
  0x2f   :  { %678 = vmatprep.subr.bf16.mxu0 %v789_v1  ;;  %v745_v41 = vpack.c.bf16 %v338_v40, %v337_v39 }
  0x30   :  { %701 = vmatpush3.bf16.msra.mxu1 %v700_v48 }
  0x31   :  { %702 = vmatprep.subr.bf16.mxu1 %v789_v1 }
  0x32   :  { %680 = vmatpush3.bf16.msra.mxu0 %v679_v45  ;;  %v444_v45 = vld [vmem:[%s890_s2 + $0x2] ss:$0 sm:$0xff] }
  0x33   :  { %705 = vmatprep.subr.bf16.mxu0 %v789_v1 }
  0x34   :  { %704 = vmatpush3.bf16.msra.mxu1 %v703_v57  ;;  %v446_v57 = vld [vmem:[%s890_s2 + $0x4] ss:$0 sm:$0xff] }
  0x35   :  { %729 = vmatprep.subr.bf16.mxu1 %v789_v1 }
  0x93   :  { %v33_v51 = vpop.permute.xlu0 %32 }
  0x94   :  { %v39_v52 = vmul.f32 %v441_v49, %v33_v51  ;;  %v342_v51 = vld [vmem:[#allocation2 + $0x278] sm:$0xff] }
  0x96   :  { %v45_v53 = vadd.f32 %v442_v50, %v39_v52  ;;  %v341_v50 = vld [vmem:[#allocation2 + $0x270] sm:$0xff] }
  0x97   :  { %v751_v52 = vpack.c.bf16 %v342_v51, %v341_v50 }
  0x98   :  { %v46_v54 = vmax.f32 %v45_v53, 0.0  ;;  %v445_v53 = vld [vmem:[%s890_s2 + $0x3] ss:$0 sm:$0xff] }
  0x9a   :  { %550 = vmatmul.mubr.f32.vlgmr.msra.gmra.mrb[0].mxu0 %v46_v54 }
  0x9b   :  { %619 = vmatprep.mubr.msk.f32.mxu0 %vm790_vm0, %v791_v12  ;;  %707 = vmatpush3.bf16.msra.mxu0 %v706_v61  ;;  %v447_v61 = vld [vmem:[#allocation2 + $0x280] ss:$0 sm:$0xff] }
  0x9c   :  { %708 = vmatprep.subr.bf16.mxu0 %v789_v1 }
  0x9f   :  { %710 = vmatpush3.bf16.msra.mxu0 %v709_v63 }
  0xa0   :  { %711 = vmatprep.subr.bf16.mxu0 %v789_v1 }
  0xa3   :  { %713 = vmatpush3.bf16.msra.mxu0 %v712_v3 }
  0xa4   :  { %714 = vmatprep.subr.bf16.mxu0 %v789_v1 }
  0xa7   :  { %716 = vmatpush3.bf16.msra.mxu0 %v715_v6 }
  0xa8   :  { %717 = vmatprep.subr.bf16.mxu0 %v789_v1 }
  0xab   :  { %719 = vmatpush3.bf16.msra.mxu0 %v718_v9 }
  0xac   :  { %720 = vmatprep.subr.bf16.mxu0 %v789_v1 }
  0xaf   :  { %722 = vmatpush3.bf16.msra.mxu0 %v721_v13 }
  0xb0   :  { %723 = vmatprep.subr.bf16.mxu0 %v789_v1 }
  0xb3   :  { %725 = vmatpush3.bf16.msra.mxu0 %v724_v16 }
  0xb4   :  { %726 = vmatprep.subr.bf16.mxu0 %v789_v1 }
  0xb7   :  { %728 = vmatpush3.bf16.msra.mxu0 %v727_v24 }
 0x16d   :  { %v135_v18 = vpop.f32.mrb[0].mxu0 }
 0x16e   :  { %v136_v19 = vadd.f32 %v443_v17, %v135_v18  ;;  %v551_v20 = vpop.f32.mrb[1].mxu0 }
 0x170   :  { %v139_v21 = vmax.f32 %v136_v19, 0.0 }
 0x172   :  { %585 = vmatmul.mubr.f32.vlgmr.msra.gmra.mrb[0].mxu1 %v139_v21 }
 0x173   :  { %654 = vmatprep.mubr.msk.f32.mxu1 %vm790_vm0, %v791_v12  ;;  %731 = vmatpush3.bf16.msra.mxu1 %v730_v28  ;;  %v333_v12 = vld [vmem:[#allocation2 + $0x230] sm:$0xff] }
 0x174   :  { %732 = vmatprep.subr.bf16.mxu1 %v789_v1  ;;  %v739_v35 = vpack.c.bf16 %v334_v34, %v333_v12 }
 0x177   :  { %734 = vmatpush3.bf16.msra.mxu1 %v733_v30 }
 0x178   :  { %735 = vmatprep.subr.bf16.mxu1 %v789_v1 }
 0x17b   :  { %737 = vmatpush3.bf16.msra.mxu1 %v736_v33 }
 0x17c   :  { %738 = vmatprep.subr.bf16.mxu1 %v789_v1 }
 0x17f   :  { %740 = vmatpush3.bf16.msra.mxu1 %v739_v35 }
 0x180   :  { %741 = vmatprep.subr.bf16.mxu1 %v789_v1 }
 0x183   :  { %743 = vmatpush3.bf16.msra.mxu1 %v742_v38 }
 0x184   :  { %744 = vmatprep.subr.bf16.mxu1 %v789_v1 }
 0x187   :  { %746 = vmatpush3.bf16.msra.mxu1 %v745_v41 }
 0x188   :  { %747 = vmatprep.subr.bf16.mxu1 %v789_v1 }
 0x18b   :  { %749 = vmatpush3.bf16.msra.mxu1 %v748_v44 }
 0x18c   :  { %750 = vmatprep.subr.bf16.mxu1 %v789_v1 }
 0x18f   :  { %752 = vmatpush3.bf16.msra.mxu1 %v751_v52 }
 0x245   :  { %v228_v46 = vpop.f32.mrb[0].mxu1 }
 0x246   :  { %v229_v47 = vadd.f32 %v444_v45, %v228_v46  ;;  %v586_v48 = vpop.f32.mrb[1].mxu1 }
 0x248   :  { %v232_v49 = vmax.f32 %v229_v47, 0.0 }
 0x24a   :  { %620 = vmatmul.mubr.f32.vlgmr.msra.gmra.mrb[2].mxu0 %v232_v49 }
 0x31d   :  { %v321_v54 = vpop.f32.mrb[2].mxu0 }
 0x31e   :  { %v322_v55 = vadd.f32 %v445_v53, %v321_v54  ;;  %v621_v1 = vpop.f32.mrb[3].mxu0 }
 0x320   :  { %v325_v56 = vmax.f32 %v322_v55, 0.0 }
 0x322   :  { %655 = vmatmul.mubr.f32.vlgmr.msra.gmra.mrb[2].mxu1 %v325_v56 }
 0x3f5   :  { %v414_v58 = vpop.f32.mrb[2].mxu1 }
 0x3f6   :  { %v415_v59 = vadd.f32 %v446_v57, %v414_v58  ;;  %v656_v60 = vpop.f32.mrb[3].mxu1 }
 0x3f8   :  { %v418_v62 = vmax.f32 %v415_v59, 0.0 }
 0x3fa   :  { %v425_v63 = vmul.f32 %v447_v61, %v418_v62 }
 0x3fc   :  { %426 = vadd.xlane.f32.xlu0 %v425_v63 }
 0x489   :  { %v427_v2 = vpop.xlane.xlu0 %426 }
 0x48a   :  { %v433_v3 = vadd.f32 %v448_v0, %v427_v2 }
 0x48c   :  { %435 = vst.msk [vmem:[%s891_s3] sm:$0xff] %vm434_vm1, %v433_v3 }
 0x48d   :  { %440 = vsyncpa [#allocation3], 1 }

</bundles_post_ra>
